<compile_context>
chip_gen: v7x
topology: tpu7x:2x2x1
jax: 0.10.0
libtpu: 0.0.40
codegen_flags: <defaults>
</compile_context>

<pallas_src>
import math
from functools import partial

import jax
import jax.numpy as jnp
from jax.experimental import pallas as pl
from jax.experimental.pallas import tpu as pltpu


_GELU_C = math.sqrt(2.0 / math.pi)


def _gelu_tanh_f32(x):
    # PyTorch nn.GELU(approximate='tanh'), computed in f32:
    # 0.5 * x * (1 + tanh( sqrt(2/pi) * (x + 0.044715 * x^3) ))
    x = x.astype(jnp.float32)
    return 0.5 * x * (1.0 + jnp.tanh(_GELU_C * (x + 0.044715 * x * x * x)))


# -----------------------------------------------------------------------------
# Kernel A: weights fully resident in VMEM; grid tiles the token axis only.
# -----------------------------------------------------------------------------
def _mlp_kernel_resident(x_ref, w1_ref, b1_ref, w2_ref, b2_ref, o_ref):
    # x_ref: (tm, D), w1_ref: (D, H), b1_ref: (1, H), w2_ref: (H, D), b2_ref: (1, D)
    x = x_ref[...]                                   # input dtype (bf16 / f32)

    # c_fc on the MXU: operands in input dtype, f32 accumulation.
    h = jnp.dot(x, w1_ref[...], preferred_element_type=jnp.float32)
    h = _gelu_tanh_f32(h + b1_ref[...].astype(jnp.float32))
    h = h.astype(x.dtype)                            # narrow for second MXU pass

    # c_proj; fold the bias add into the output cast (no extra f32 temp kept).
    y = jnp.dot(h, w2_ref[...], preferred_element_type=jnp.float32)
    o_ref[...] = (y + b2_ref[...].astype(jnp.float32)).astype(o_ref.dtype)


# -----------------------------------------------------------------------------
# Kernel B: hidden (H) axis tiled as a reduction; (tm, D) f32 accumulator.
# Used when resident weights would not fit VMEM (large models, esp. v7x).
# -----------------------------------------------------------------------------
def _mlp_kernel_htiled(x_ref, w1_ref, b1_ref, w2_ref, b2_ref, o_ref, acc_ref):
    j = pl.program_id(1)

    @pl.when(j == 0)
    def _init():
        acc_ref[...] = jnp.zeros_like(acc_ref)

    x = x_ref[...]                                   # (tm, D)
    h = jnp.dot(x, w1_ref[...], preferred_element_type=jnp.float32)     # (tm, th)
    h = _gelu_tanh_f32(h + b1_ref[...].astype(jnp.float32))
    h = h.astype(x.dtype)
    acc_ref[...] += jnp.dot(h, w2_ref[...], preferred_element_type=jnp.float32)

    @pl.when(j == pl.num_programs(1) - 1)
    def _finalize():
        o_ref[...] = (acc_ref[...] + b2_ref[...].astype(jnp.float32)).astype(o_ref.dtype)


def _pick_block_h(H, block_h):
    """Largest multiple of 128 that divides H, capped at block_h (or None)."""
    cap = max(128, (min(block_h, H) // 128) * 128)
    th = cap
    while th >= 128:
        if H % th == 0:
            return th
        th -= 128
    return None


@partial(jax.jit, static_argnames=("block_m", "block_h", "force_h_tiling",
                                   "single_buffer_weights"))
def _mlp_forward_impl(x, w1, b1, w2, b2, *, block_m, block_h, force_h_tiling,
                      single_buffer_weights):
    B, T, D = x.shape
    H = w1.shape[1]
    M = B * T
    dtype = x.dtype
    itemsize = jnp.dtype(dtype).itemsize

    x2d = x.reshape(M, D)
    b1_2d = b1.reshape(1, H)
    b2_2d = b2.reshape(1, D)

    # ---- token-axis tile (big, MXU-aligned; clamp to M for tiny problems) ----
    align = 16 if itemsize == 2 else 8
    tm = min(block_m, M)
    if tm < M:
        tm = max(align, (tm // align) * align)
    grid_m = pl.cdiv(M, tm)

    # ---- choose resident-weights vs H-tiled reduction layout ----
    w_buf_factor = 1 if single_buffer_weights else 2
    resident_bytes = (
        w_buf_factor * (D * H + H + H * D + D) * itemsize   # resident weights/biases
        + tm * H * 4 + tm * H * itemsize                     # f32 h + narrowed h
        + 4 * tm * D * itemsize                              # double-buffered x / out tiles
        + tm * D * 4                                         # f32 y before cast
    )
    th = _pick_block_h(H, block_h)
    use_htiled = (force_h_tiling or resident_bytes > (28 << 20)) and th is not None

    if not use_htiled:
        vmem_limit = int(min(max(resident_bytes * 5 // 4 + (4 << 20), 32 << 20),
                             64 << 20))
        # Constant index_map -> weights never change; double-buffering them only
        # burns VMEM.  (Falls back to default buffering if unsupported; see
        # mlp_forward wrapper.)
        w_mode = {"pipeline_mode": pl.Buffered(1)} if single_buffer_weights else {}
        out2d = pl.pallas_call(
            _mlp_kernel_resident,
            out_shape=jax.ShapeDtypeStruct((M, D), dtype),
            grid_spec=pltpu.PrefetchScalarGridSpec(
                num_scalar_prefetch=0,
                grid=(grid_m,),
                in_specs=[
                    pl.BlockSpec((tm, D), lambda i: (i, 0)),            # x tile
                    pl.BlockSpec((D, H), lambda i: (0, 0), **w_mode),   # W1 (resident)
                    pl.BlockSpec((1, H), lambda i: (0, 0), **w_mode),   # b1
                    pl.BlockSpec((H, D), lambda i: (0, 0), **w_mode),   # W2 (resident)
                    pl.BlockSpec((1, D), lambda i: (0, 0), **w_mode),   # b2
                ],
                out_specs=pl.BlockSpec((tm, D), lambda i: (i, 0)),
            ),
            compiler_params=pltpu.CompilerParams(
                dimension_semantics=("parallel",),
                vmem_limit_bytes=vmem_limit,
            ),
        )(x2d, w1, b1_2d, w2, b2_2d)
    else:
        grid_h = H // th
        htiled_bytes = (
            2 * (D * th + th + th * D) * itemsize + D * itemsize  # pipelined weight tiles
            + tm * th * 4 + tm * th * itemsize                    # f32 h chunk + narrowed
            + 4 * tm * D * itemsize                               # x / out tiles
            + tm * D * 4                                          # f32 accumulator
        )
        vmem_limit = int(min(max(htiled_bytes * 5 // 4 + (4 << 20), 32 << 20),
                             64 << 20))
        out2d = pl.pallas_call(
            _mlp_kernel_htiled,
            out_shape=jax.ShapeDtypeStruct((M, D), dtype),
            grid_spec=pltpu.PrefetchScalarGridSpec(
                num_scalar_prefetch=0,
                grid=(grid_m, grid_h),
                in_specs=[
                    pl.BlockSpec((tm, D), lambda i, j: (i, 0)),   # x tile
                    pl.BlockSpec((D, th), lambda i, j: (0, j)),   # W1 column block
                    pl.BlockSpec((1, th), lambda i, j: (0, j)),   # b1 chunk
                    pl.BlockSpec((th, D), lambda i, j: (j, 0)),   # W2 row block
                    pl.BlockSpec((1, D), lambda i, j: (0, 0)),    # b2
                ],
                out_specs=pl.BlockSpec((tm, D), lambda i, j: (i, 0)),
                scratch_shapes=[pltpu.VMEM((tm, D), jnp.float32)],
            ),
            compiler_params=pltpu.CompilerParams(
                dimension_semantics=("parallel", "arbitrary"),
                vmem_limit_bytes=vmem_limit,
            ),
        )(x2d, w1, b1_2d, w2, b2_2d)

    return out2d.reshape(B, T, D)


def mlp_forward(x, w1, b1, w2, b2, *, block_m=256, block_h=512, force_h_tiling=False):
    """x: [B, T, D]; w1: [D, 4D]; b1: [4D]; w2: [4D, D]; b2: [D]."""
    try:
        return _mlp_forward_impl(x, w1, b1, w2, b2, block_m=block_m, block_h=block_h,
                                 force_h_tiling=force_h_tiling,
                                 single_buffer_weights=True)
    except Exception:
        # Fallback for JAX builds where pl.Buffered(1) on pallas_call BlockSpecs
        # is unavailable; identical semantics, default (double) buffering.
        return _mlp_forward_impl(x, w1, b1, w2, b2, block_m=block_m, block_h=block_h,
                                 force_h_tiling=force_h_tiling,
                                 single_buffer_weights=False)


def mlp_reference_f32(x, w1, b1, w2, b2):
    x, w1, b1, w2, b2 = (a.astype(jnp.float32) for a in (x, w1, b1, w2, b2))
    h = _gelu_tanh_f32(jnp.einsum("btd,dh->bth", x, w1) + b1)
    return jnp.einsum("bth,hd->btd", h, w2) + b2


if __name__ == "__main__":
    key = jax.random.PRNGKey(0)
    keys = jax.random.split(key, 10)

    # ---- test 1: f32, n_embd=32, hidden=128 (resident-weights path) ----
    B, T, D = 2, 8, 32
    H = 4 * D
    x = jax.random.normal(keys[0], (B, T, D), dtype=jnp.float32)
    w1 = jax.random.normal(keys[1], (D, H), dtype=jnp.float32) * (1.0 / math.sqrt(D))
    b1 = jax.random.normal(keys[2], (H,), dtype=jnp.float32) * 0.02
    w2 = jax.random.normal(keys[3], (H, D), dtype=jnp.float32) * (1.0 / math.sqrt(H))
    b2 = jax.random.normal(keys[4], (D,), dtype=jnp.float32) * 0.02

    out = jax.block_until_ready(mlp_forward(x, w1, b1, w2, b2))
    ref = mlp_reference_f32(x, w1, b1, w2, b2)
    assert out.shape == (B, T, D)
    assert jnp.allclose(out, ref, atol=1e-3, rtol=1e-3), "f32 resident path mismatch"

    # ---- test 2: bf16 operands (real GPT dtype), f32 accumulation ----
    xb, w1b, b1b, w2b, b2b = (a.astype(jnp.bfloat16) for a in (x, w1, b1, w2, b2))
    outb = jax.block_until_ready(mlp_forward(xb, w1b, b1b, w2b, b2b))
    refb = mlp_reference_f32(xb, w1b, b1b, w2b, b2b)
    assert outb.dtype == jnp.bfloat16
    assert jnp.allclose(outb.astype(jnp.float32), refb, atol=5e-2, rtol=5e-2), \
        "bf16 path mismatch"

    # ---- test 3: H-tiled reduction path (large-model / v7x layout), forced ----
    D2 = 64
    H2 = 4 * D2
    x2 = jax.random.normal(keys[5], (B, T, D2), dtype=jnp.float32)
    w1_2 = jax.random.normal(keys[6], (D2, H2), dtype=jnp.float32) * (1.0 / math.sqrt(D2))
    b1_2 = jax.random.normal(keys[7], (H2,), dtype=jnp.float32) * 0.02
    w2_2 = jax.random.normal(keys[8], (H2, D2), dtype=jnp.float32) * (1.0 / math.sqrt(H2))
    b2_2 = jax.random.normal(keys[9], (D2,), dtype=jnp.float32) * 0.02
    out2 = jax.block_until_ready(
        mlp_forward(x2, w1_2, b1_2, w2_2, b2_2, force_h_tiling=True, block_h=128))
    ref2 = mlp_reference_f32(x2, w1_2, b1_2, w2_2, b2_2)
    assert jnp.allclose(out2, ref2, atol=1e-3, rtol=1e-3), "H-tiled path mismatch"

    print("KERNEL_OK")
</pallas_src>

<mosaic_0001>
module attributes {stable_mosaic.version = 11 : i64} {
  func.func @_mlp_kernel_resident(%arg0: i32, %arg1: memref<16x32xf32, #tpu.memory_space<vmem>>, %arg2: memref<32x128xf32, #tpu.memory_space<vmem>>, %arg3: memref<1x128xf32, #tpu.memory_space<vmem>>, %arg4: memref<128x32xf32, #tpu.memory_space<vmem>>, %arg5: memref<1x32xf32, #tpu.memory_space<vmem>>, %arg6: memref<16x32xf32, #tpu.memory_space<vmem>>) attributes {dimension_semantics = [#tpu.dimension_semantics<parallel>], iteration_bounds = array<i64: 1>, scalar_prefetch = 0 : i64, scratch_operands = 0 : i64, tpu.core_type = #tpu.core_type<tc>, window_params = [{transform_indices = @transform_0, window_bounds = array<i64: 16, 32>}, {pipeline_mode = #tpu.pipeline_mode<synchronous>, transform_indices = @transform_1, window_bounds = array<i64: 32, 128>}, {pipeline_mode = #tpu.pipeline_mode<synchronous>, transform_indices = @transform_2, window_bounds = array<i64: 1, 128>}, {pipeline_mode = #tpu.pipeline_mode<synchronous>, transform_indices = @transform_3, window_bounds = array<i64: 128, 32>}, {pipeline_mode = #tpu.pipeline_mode<synchronous>, transform_indices = @transform_4, window_bounds = array<i64: 1, 32>}, {transform_indices = @transform_5, window_bounds = array<i64: 16, 32>}]} {
    %c0 = arith.constant 0 : index
    %c0_0 = arith.constant 0 : index
    %0 = vector.load %arg1[%c0, %c0_0] : memref<16x32xf32, #tpu.memory_space<vmem>>, vector<16x32xf32>
    %c0_1 = arith.constant 0 : index
    %c0_2 = arith.constant 0 : index
    %1 = vector.load %arg2[%c0_1, %c0_2] : memref<32x128xf32, #tpu.memory_space<vmem>>, vector<32x128xf32>
    %cst = arith.constant dense<0.000000e+00> : vector<16x128xf32>
    %2 = tpu.matmul %0, %1, %cst {dimension_numbers = #tpu.dot_dimension_numbers<[1], [0], [0], [1], [0, 0, 1, 1], [], []>} : vector<16x32xf32>, vector<32x128xf32>, vector<16x128xf32> -> vector<16x128xf32>
    %c0_3 = arith.constant 0 : index
    %c0_4 = arith.constant 0 : index
    %3 = vector.load %arg3[%c0_3, %c0_4] : memref<1x128xf32, #tpu.memory_space<vmem>>, vector<1x128xf32>
    %4 = vector.broadcast %3 : vector<1x128xf32> to vector<16x128xf32>
    %5 = arith.addf %2, %4 : vector<16x128xf32>
    %cst_5 = arith.constant 5.000000e-01 : f32
    %6 = vector.broadcast %cst_5 : f32 to vector<16x128xf32>
    %7 = arith.mulf %6, %5 : vector<16x128xf32>
    %cst_6 = arith.constant 4.471500e-02 : f32
    %8 = vector.broadcast %cst_6 : f32 to vector<16x128xf32>
    %9 = arith.mulf %8, %5 : vector<16x128xf32>
    %10 = arith.mulf %9, %5 : vector<16x128xf32>
    %11 = arith.mulf %10, %5 : vector<16x128xf32>
    %12 = arith.addf %5, %11 : vector<16x128xf32>
    %cst_7 = arith.constant 0.797884583 : f32
    %13 = vector.broadcast %cst_7 : f32 to vector<16x128xf32>
    %14 = arith.mulf %13, %12 : vector<16x128xf32>
    %15 = math.tanh %14 : vector<16x128xf32>
    %cst_8 = arith.constant 1.000000e+00 : f32
    %16 = vector.broadcast %cst_8 : f32 to vector<16x128xf32>
    %17 = arith.addf %16, %15 : vector<16x128xf32>
    %18 = arith.mulf %7, %17 : vector<16x128xf32>
    %c0_9 = arith.constant 0 : index
    %c0_10 = arith.constant 0 : index
    %19 = vector.load %arg4[%c0_9, %c0_10] : memref<128x32xf32, #tpu.memory_space<vmem>>, vector<128x32xf32>
    %cst_11 = arith.constant dense<0.000000e+00> : vector<16x32xf32>
    %20 = tpu.matmul %18, %19, %cst_11 {dimension_numbers = #tpu.dot_dimension_numbers<[1], [0], [0], [1], [0, 0, 1, 1], [], []>} : vector<16x128xf32>, vector<128x32xf32>, vector<16x32xf32> -> vector<16x32xf32>
    %c0_12 = arith.constant 0 : index
    %c0_13 = arith.constant 0 : index
    %21 = vector.load %arg5[%c0_12, %c0_13] : memref<1x32xf32, #tpu.memory_space<vmem>>, vector<1x32xf32>
    %22 = vector.broadcast %21 : vector<1x32xf32> to vector<16x32xf32>
    %23 = arith.addf %20, %22 : vector<16x32xf32>
    %c0_14 = arith.constant 0 : index
    %c0_15 = arith.constant 0 : index
    %24 = vector.load %arg6[%c0_14, %c0_15] : memref<16x32xf32, #tpu.memory_space<vmem>>, vector<16x32xf32>
    tpu.vector_store %arg6[%c0_14, %c0_15], %23 {strides = array<i32>} : memref<16x32xf32, #tpu.memory_space<vmem>>, vector<16x32xf32>,
    return
  }
  func.func @transform_0(%arg0: i32) -> (i32, i32) {
    %c0_i32 = arith.constant 0 : i32
    %c0_i32_0 = arith.constant 0 : i32
    return %arg0, %c0_i32 : i32, i32
  }
  func.func @transform_1(%arg0: i32) -> (i32, i32) {
    %c0_i32 = arith.constant 0 : i32
    %c0_i32_0 = arith.constant 0 : i32
    %c0_i32_1 = arith.constant 0 : i32
    return %c0_i32, %c0_i32_0 : i32, i32
  }
  func.func @transform_2(%arg0: i32) -> (i32, i32) {
    %c0_i32 = arith.constant 0 : i32
    %c0_i32_0 = arith.constant 0 : i32
    %c0_i32_1 = arith.constant 0 : i32
    return %c0_i32, %c0_i32_0 : i32, i32
  }
  func.func @transform_3(%arg0: i32) -> (i32, i32) {
    %c0_i32 = arith.constant 0 : i32
    %c0_i32_0 = arith.constant 0 : i32
    %c0_i32_1 = arith.constant 0 : i32
    return %c0_i32, %c0_i32_0 : i32, i32
  }
  func.func @transform_4(%arg0: i32) -> (i32, i32) {
    %c0_i32 = arith.constant 0 : i32
    %c0_i32_0 = arith.constant 0 : i32
    %c0_i32_1 = arith.constant 0 : i32
    return %c0_i32, %c0_i32_0 : i32, i32
  }
  func.func @transform_5(%arg0: i32) -> (i32, i32) {
    %c0_i32 = arith.constant 0 : i32
    %c0_i32_0 = arith.constant 0 : i32
    return %arg0, %c0_i32 : i32, i32
  }
}

module attributes {stable_mosaic.version = 11 : i64} {
  func.func @_mlp_kernel_resident(%arg0: i32, %arg1: memref<16x32xf32, #tpu.memory_space<vmem>>, %arg2: memref<32x128xf32, #tpu.memory_space<vmem>>, %arg3: memref<1x128xf32, #tpu.memory_space<vmem>>, %arg4: memref<128x32xf32, #tpu.memory_space<vmem>>, %arg5: memref<1x32xf32, #tpu.memory_space<vmem>>, %arg6: memref<16x32xf32, #tpu.memory_space<vmem>>) attributes {dimension_semantics = [#tpu.dimension_semantics<parallel>], iteration_bounds = array<i64: 1>, scalar_prefetch = 0 : i64, scratch_operands = 0 : i64, tpu.core_type = #tpu.core_type<tc>, window_params = [{transform_indices = @transform_0, window_bounds = array<i64: 16, 32>}, {pipeline_mode = #tpu.pipeline_mode<synchronous>, transform_indices = @transform_1, window_bounds = array<i64: 32, 128>}, {pipeline_mode = #tpu.pipeline_mode<synchronous>, transform_indices = @transform_2, window_bounds = array<i64: 1, 128>}, {pipeline_mode = #tpu.pipeline_mode<synchronous>, transform_indices = @transform_3, window_bounds = array<i64: 128, 32>}, {pipeline_mode = #tpu.pipeline_mode<synchronous>, transform_indices = @transform_4, window_bounds = array<i64: 1, 32>}, {transform_indices = @transform_5, window_bounds = array<i64: 16, 32>}]} {
    %c0 = arith.constant 0 : index
    %c0_0 = arith.constant 0 : index
    %0 = vector.load %arg1[%c0, %c0_0] : memref<16x32xf32, #tpu.memory_space<vmem>>, vector<16x32xf32>
    %c0_1 = arith.constant 0 : index
    %c0_2 = arith.constant 0 : index
    %1 = vector.load %arg2[%c0_1, %c0_2] : memref<32x128xf32, #tpu.memory_space<vmem>>, vector<32x128xf32>
    %cst = arith.constant dense<0.000000e+00> : vector<16x128xf32>
    %2 = tpu.matmul %0, %1, %cst {dimension_numbers = #tpu.dot_dimension_numbers<[1], [0], [0], [1], [0, 0, 1, 1], [], []>} : vector<16x32xf32>, vector<32x128xf32>, vector<16x128xf32> -> vector<16x128xf32>
    %c0_3 = arith.constant 0 : index
    %c0_4 = arith.constant 0 : index
    %3 = vector.load %arg3[%c0_3, %c0_4] : memref<1x128xf32, #tpu.memory_space<vmem>>, vector<1x128xf32>
    %4 = vector.broadcast %3 : vector<1x128xf32> to vector<16x128xf32>
    %5 = arith.addf %2, %4 : vector<16x128xf32>
    %cst_5 = arith.constant 5.000000e-01 : f32
    %6 = vector.broadcast %cst_5 : f32 to vector<16x128xf32>
    %7 = arith.mulf %6, %5 : vector<16x128xf32>
    %cst_6 = arith.constant 4.471500e-02 : f32
    %8 = vector.broadcast %cst_6 : f32 to vector<16x128xf32>
    %9 = arith.mulf %8, %5 : vector<16x128xf32>
    %10 = arith.mulf %9, %5 : vector<16x128xf32>
    %11 = arith.mulf %10, %5 : vector<16x128xf32>
    %12 = arith.addf %5, %11 : vector<16x128xf32>
    %cst_7 = arith.constant 0.797884583 : f32
    %13 = vector.broadcast %cst_7 : f32 to vector<16x128xf32>
    %14 = arith.mulf %13, %12 : vector<16x128xf32>
    %15 = math.tanh %14 : vector<16x128xf32>
    %cst_8 = arith.constant 1.000000e+00 : f32
    %16 = vector.broadcast %cst_8 : f32 to vector<16x128xf32>
    %17 = arith.addf %16, %15 : vector<16x128xf32>
    %18 = arith.mulf %7, %17 : vector<16x128xf32>
    %c0_9 = arith.constant 0 : index
    %c0_10 = arith.constant 0 : index
    %19 = vector.load %arg4[%c0_9, %c0_10] : memref<128x32xf32, #tpu.memory_space<vmem>>, vector<128x32xf32>
    %cst_11 = arith.constant dense<0.000000e+00> : vector<16x32xf32>
    %20 = tpu.matmul %18, %19, %cst_11 {dimension_numbers = #tpu.dot_dimension_numbers<[1], [0], [0], [1], [0, 0, 1, 1], [], []>} : vector<16x128xf32>, vector<128x32xf32>, vector<16x32xf32> -> vector<16x32xf32>
    %c0_12 = arith.constant 0 : index
    %c0_13 = arith.constant 0 : index
    %21 = vector.load %arg5[%c0_12, %c0_13] : memref<1x32xf32, #tpu.memory_space<vmem>>, vector<1x32xf32>
    %22 = vector.broadcast %21 : vector<1x32xf32> to vector<16x32xf32>
    %23 = arith.addf %20, %22 : vector<16x32xf32>
    %c0_14 = arith.constant 0 : index
    %c0_15 = arith.constant 0 : index
    %24 = vector.load %arg6[%c0_14, %c0_15] : memref<16x32xf32, #tpu.memory_space<vmem>>, vector<16x32xf32>
    tpu.vector_store %arg6[%c0_14, %c0_15], %23 {strides = array<i32>} : memref<16x32xf32, #tpu.memory_space<vmem>>, vector<16x32xf32>,
    return
  }
  func.func @transform_0(%arg0: i32) -> (i32, i32) {
    %c0_i32 = arith.constant 0 : i32
    %c0_i32_0 = arith.constant 0 : i32
    return %arg0, %c0_i32 : i32, i32
  }
  func.func @transform_1(%arg0: i32) -> (i32, i32) {
    %c0_i32 = arith.constant 0 : i32
    %c0_i32_0 = arith.constant 0 : i32
    %c0_i32_1 = arith.constant 0 : i32
    return %c0_i32, %c0_i32_0 : i32, i32
  }
  func.func @transform_2(%arg0: i32) -> (i32, i32) {
    %c0_i32 = arith.constant 0 : i32
    %c0_i32_0 = arith.constant 0 : i32
    %c0_i32_1 = arith.constant 0 : i32
    return %c0_i32, %c0_i32_0 : i32, i32
  }
  func.func @transform_3(%arg0: i32) -> (i32, i32) {
    %c0_i32 = arith.constant 0 : i32
    %c0_i32_0 = arith.constant 0 : i32
    %c0_i32_1 = arith.constant 0 : i32
    return %c0_i32, %c0_i32_0 : i32, i32
  }
  func.func @transform_4(%arg0: i32) -> (i32, i32) {
    %c0_i32 = arith.constant 0 : i32
    %c0_i32_0 = arith.constant 0 : i32
    %c0_i32_1 = arith.constant 0 : i32
    return %c0_i32, %c0_i32_0 : i32, i32
  }
  func.func @transform_5(%arg0: i32) -> (i32, i32) {
    %c0_i32 = arith.constant 0 : i32
    %c0_i32_0 = arith.constant 0 : i32
    return %arg0, %c0_i32 : i32, i32
  }
}

</mosaic_0001>

<bundles_post_ra>
// kernel: _mlp_forward_impl.1
= control target key start
LH: loop header
LB: loop body
LE: loop exit
PB: predicated region body
PF: predicated region fallthrough
CT: control target
= control target key end

     0   :  { %vm34_vm0 = vcmask 261120   ;;  %s516_s0 = inlined_call_operand.vmem [shape: f32[16,32], index: 0, kind: input, shape index: {}]   ;;  %s517_s1 = inlined_call_operand.vmem [shape: f32[32,128], index: 1, kind: input, shape index: {}]   ;;  %s518_s2 = inlined_call_operand.vmem [shape: f32[1,128], index: 2, kind: input, shape index: {}]   ;;  %s519_s3 = inlined_call_operand.vmem [shape: f32[128,32], index: 3, kind: input, shape index: {}]   ;;  %s520_s4 = inlined_call_operand.vmem [shape: f32[1,32], index: 4, kind: input, shape index: {}]   ;;  %s521_s5 = inlined_call_operand.hbm [shape: f32[16,32], index: 5, kind: output, shape index: {}]  }
   0x1   :  { %v23_v0 = vld [vmem:[%s517_s1] sm:$0xff]  ;;  %v24_v1 = vld [vmem:[%s517_s1 + $0x8] sm:$0xff]  ;;  %v25_v2 = vld [vmem:[%s517_s1 + $0x10] sm:$0xff] }
   0x2   :  { %v324_v3 = vpack.c.bf16 %v24_v1, %v23_v0  ;;  %v26_v4 = vld [vmem:[%s517_s1 + $0x18] sm:$0xff]  ;;  %v21_v5 = vld [vmem:[%s516_s0] sm:$0xff]  ;;  %v135_v8 = vld [vmem:[%s519_s3 + $0x8] sm:$0xff] }
   0x3   :  { %v328_v6 = vpack.c.bf16 %v26_v4, %v25_v2  ;;  %286 = vmatprep.mubr.msk.f32.mxu0 %vm34_vm0, %v21_v5  ;;  %v134_v7 = vld [vmem:[%s519_s3] sm:$0xff] }
   0x4   :  { %10 = vsyncpa [#allocation3], 0  ;;  %325 = vmatprep.subr.bf16.mxu0 %v324_v3  ;;  %v332_v9 = vpack.c.bf16 %v135_v8, %v134_v7  ;;  %v22_v10 = vld [vmem:[%s516_s0 + $0x8] sm:$0xff]  ;;  %v136_v11 = vld [vmem:[%s519_s3 + $0x10] sm:$0xff]  ;;  %s395_s11 = smov [#allocation2]  }
   0x5   :  { %327 = vmatpush3.bf16.msra.mxu0 %v324_v3  ;;  %v137_v12 = vld [vmem:[%s519_s3 + $0x18] sm:$0xff]  ;;  %v138_v14 = vld [vmem:[%s519_s3 + $0x20] sm:$0xff]  ;;  %v139_v15 = vld [vmem:[%s519_s3 + $0x28] sm:$0xff]  ;;  %s239_s12 = sshll.u32 %s395_s11, 4  ;;  %s240_s12 = int_to_ptr.vmem [resolvable:$true] %s239_s12 }
   0x6   :  { %329 = vmatprep.subr.bf16.mxu0 %v328_v6  ;;  %333 = vmatprep.subr.bf16.mxu1 %v332_v9  ;;  %v336_v13 = vpack.c.bf16 %v137_v12, %v136_v11  ;;  %v340_v16 = vpack.c.bf16 %v139_v15, %v138_v14  ;;  %v140_v17 = vld [vmem:[%s519_s3 + $0x30] sm:$0xff]  ;;  %v141_v18 = vld [vmem:[%s519_s3 + $0x38] sm:$0xff]  ;;  %v142_v19 = vld [vmem:[%s519_s3 + $0x40] sm:$0xff]  ;;  %s371_s13 = scalar_lea.vmem %s240_s12, 256  ;;  %p376_p1 = scmp.lt.s32.totalorder %s240_s12, %s240_s12 }
   0x7   :  { %335 = vmatpush3.bf16.msra.mxu1 %v332_v9  ;;  %v344_v20 = vpack.c.bf16 %v141_v18, %v140_v17  ;;  %v143_v21 = vld [vmem:[%s519_s3 + $0x48] sm:$0xff]  ;;  %v144_v23 = vld [vmem:[%s519_s3 + $0x50] sm:$0xff]  ;;  %v145_v24 = vld [vmem:[%s519_s3 + $0x58] sm:$0xff]  ;;  %p372_p0 = scmp.ne.s32.totalorder %s240_s12, %s371_s13  ;;  %p377_p2 = scmp.lt.s32.totalorder %s371_s13, %s371_s13 }
   0x8   :  { %337 = vmatprep.subr.bf16.mxu1 %v336_v13  ;;  %v348_v22 = vpack.c.bf16 %v143_v21, %v142_v19  ;;  %v352_v25 = vpack.c.bf16 %v145_v24, %v144_v23  ;;  %v146_v26 = vld [vmem:[%s519_s3 + $0x60] sm:$0xff]  ;;  %v147_v27 = vld [vmem:[%s519_s3 + $0x68] sm:$0xff]  ;;  %v148_v29 = vld [vmem:[%s519_s3 + $0x70] sm:$0xff] }
   0x9   :  { %331 = vmatpush3.bf16.msra.mxu0 %v328_v6  ;;  %v356_v28 = vpack.c.bf16 %v147_v27, %v146_v26  ;;  %v149_v30 = vld [vmem:[%s519_s3 + $0x78] sm:$0xff]  ;;  %v250_v32 = vld [vmem:[%s518_s2] ss:$0 sm:$0xff]  ;;  %p378_p3 = por %p377_p2, %p376_p1 }
   0xa   :  { %v360_v31 = vpack.c.bf16 %v149_v30, %v148_v29  ;;  %v253_v55 = vld [vmem:[%s520_s4] ss:$0 sm:$0xff] }
   0xb   :  { %339 = vmatpush3.bf16.msra.mxu1 %v336_v13  ;;  %p379_p4 = pnand %p378_p3, %p372_p0 }
   0xc   :  { %287 = vmatmul.mubr.msk.f32.vlgmr.msra.gmra.mrb[0].mxu0 %vm34_vm0, %v22_v10  ;;  %341 = vmatprep.subr.bf16.mxu1 %v340_v16 }
   0xf   :  { %343 = vmatpush3.bf16.msra.mxu1 %v340_v16 }
  0x10   :  { %345 = vmatprep.subr.bf16.mxu1 %v344_v20 }
  0x13   :  { %347 = vmatpush3.bf16.msra.mxu1 %v344_v20 }
  0x14   :  { %349 = vmatprep.subr.bf16.mxu1 %v348_v22 }
  0x17   :  { %351 = vmatpush3.bf16.msra.mxu1 %v348_v22 }
  0x18   :  { %353 = vmatprep.subr.bf16.mxu1 %v352_v25 }
  0x1b   :  { %355 = vmatpush3.bf16.msra.mxu1 %v352_v25 }
  0x1c   :  { %357 = vmatprep.subr.bf16.mxu1 %v356_v28 }
  0x1f   :  { %359 = vmatpush3.bf16.msra.mxu1 %v356_v28 }
  0x20   :  { %361 = vmatprep.subr.bf16.mxu1 %v360_v31 }
  0x23   :  { %363 = vmatpush3.bf16.msra.mxu1 %v360_v31 }
  0xdf   :  { %v288_v33 = vpop.f32.mrb[0].mxu0 }
  0xe0   :  { %v113_v34 = vadd.f32 %v288_v33, %v250_v32  ;;  %v107_v35 = vpop.f32.mrb[1].mxu0 }
  0xe1   :  { %v108_v36 = vadd.f32 %v250_v32, %v107_v35 }
  0xe2   :  { %v119_v37 = vmul.f32 0.044715, %v113_v34  ;;  %v117_v52 = vmul.f32 0.5, %v113_v34 }
  0xe3   :  { %v118_v38 = vmul.f32 0.044715, %v108_v36  ;;  %v116_v50 = vmul.f32 0.5, %v108_v36 }
  0xe4   :  { %v121_v39 = vmul.f32 %v119_v37, %v113_v34 }
  0xe5   :  { %v120_v40 = vmul.f32 %v118_v38, %v108_v36 }
  0xe6   :  { %v123_v41 = vmul.f32 %v121_v39, %v113_v34 }
  0xe7   :  { %v122_v42 = vmul.f32 %v120_v40, %v108_v36 }
  0xe8   :  { %v125_v43 = vadd.f32 %v123_v41, %v113_v34 }
  0xe9   :  { %v124_v44 = vadd.f32 %v122_v42, %v108_v36 }
  0xea   :  { %v127_v45 = vmul.f32 0.7978846, %v125_v43 }
  0xeb   :  { %v126_v46 = vmul.f32 0.7978846, %v124_v44 }
  0xec   :  { %367 = vtanh.f32 %v127_v45 }
  0xed   :  { %369 = vtanh.f32 %v126_v46 }
  0xf6   :  { %v368_v47 = vpop.eup %367 }
  0xf7   :  { %v370_v48 = vpop.eup %369  ;;  %v131_v49 = vadd.f32 1.0, %v368_v47 }
  0xf8   :  { %v130_v51 = vadd.f32 1.0, %v370_v48 }
  0xf9   :  { %v133_v54 = vmul.f32 %v131_v49, %v117_v52 }
  0xfa   :  { %v132_v53 = vmul.f32 %v130_v51, %v116_v50 }
  0xfc   :  { %321 = vmatprep.mubr.f32.mxu1 %v132_v53 }
  0xfd   :  { %322 = vmatmul.mubr.f32.vlgmr.msra.gmra.mrb[0].mxu1 %v133_v54 }
 0x1d0   :  { %v323_v56 = vpop.f32.mrb[0].mxu1 }
 0x1d1   :  { %v229_v57 = vadd.f32 %v323_v56, %v253_v55  ;;  %v223_v58 = vpop.f32.mrb[1].mxu1 }
 0x1d2   :  { %v224_v59 = vadd.f32 %v253_v55, %v223_v58 }
 0x1d3   :  { %233 = vst.msk [vmem:[#allocation2 + $0x8] sm:$0xff] %vm34_vm0, %v229_v57 }
 0x1d4   :  { %232 = vst.msk [vmem:[#allocation2] sm:$0xff] %vm34_vm0, %v224_v59 }
 0x1d5   :  { %382 = shalt.err (!%p379_p4)
}
 0x1d6   :  { %s383_s15 = scalar_lea.hbm %s521_s5, 256 }
 0x1d7   :  { %p384_p5 = scmp.ne.s32.totalorder %s521_s5, %s383_s15  ;;  %p387_p6 = scmp.lt.u32.totalorder %s383_s15, %s521_s5 }
 0x1d9   :  { %p389_p7 = pnand %p387_p6, %p384_p5 }
 0x1db   :  { %392 = shalt.err (!%p389_p7)
}
 0x1dc   :  { %s396_s19 = smov 128   ;;  %s397_s20 = smov 8  }
 0x1dd   :  { %245 = dma.vmem_to_hbm [thread:$0]  %s240_s12, 256, %s521_s5, [#allocation3], %s396_s19, %s396_s19, %s397_s20  }
 0x1de   :  { %393 = dma.done.wait [#allocation3], 256  }
 0x1df   :  { %394 = vsyncadd [#allocation3], 4294967040 }
 0x1e0   :  { %249 = vsyncpa [#allocation3], 1 }

// kernel: _mlp_forward_impl.1
= control target key start
LH: loop header
LB: loop body
LE: loop exit
PB: predicated region body
PF: predicated region fallthrough
CT: control target
= control target key end

     0   :  { %vm34_vm0 = vcmask 261120   ;;  %s516_s0 = inlined_call_operand.vmem [shape: f32[16,32], index: 0, kind: input, shape index: {}]   ;;  %s517_s1 = inlined_call_operand.vmem [shape: f32[32,128], index: 1, kind: input, shape index: {}]   ;;  %s518_s2 = inlined_call_operand.vmem [shape: f32[1,128], index: 2, kind: input, shape index: {}]   ;;  %s519_s3 = inlined_call_operand.vmem [shape: f32[128,32], index: 3, kind: input, shape index: {}]   ;;  %s520_s4 = inlined_call_operand.vmem [shape: f32[1,32], index: 4, kind: input, shape index: {}]   ;;  %s521_s5 = inlined_call_operand.hbm [shape: f32[16,32], index: 5, kind: output, shape index: {}]  }
   0x1   :  { %v23_v0 = vld [vmem:[%s517_s1] sm:$0xff]  ;;  %v24_v1 = vld [vmem:[%s517_s1 + $0x8] sm:$0xff]  ;;  %v25_v2 = vld [vmem:[%s517_s1 + $0x10] sm:$0xff] }
   0x2   :  { %v324_v3 = vpack.c.bf16 %v24_v1, %v23_v0  ;;  %v26_v4 = vld [vmem:[%s517_s1 + $0x18] sm:$0xff]  ;;  %v21_v5 = vld [vmem:[%s516_s0] sm:$0xff]  ;;  %v135_v8 = vld [vmem:[%s519_s3 + $0x8] sm:$0xff] }
   0x3   :  { %v328_v6 = vpack.c.bf16 %v26_v4, %v25_v2  ;;  %286 = vmatprep.mubr.msk.f32.mxu0 %vm34_vm0, %v21_v5  ;;  %v134_v7 = vld [vmem:[%s519_s3] sm:$0xff] }
   0x4   :  { %10 = vsyncpa [#allocation3], 0  ;;  %325 = vmatprep.subr.bf16.mxu0 %v324_v3  ;;  %v332_v9 = vpack.c.bf16 %v135_v8, %v134_v7  ;;  %v22_v10 = vld [vmem:[%s516_s0 + $0x8] sm:$0xff]  ;;  %v136_v11 = vld [vmem:[%s519_s3 + $0x10] sm:$0xff]  ;;  %s395_s11 = smov [#allocation2]  }
   0x5   :  { %327 = vmatpush3.bf16.msra.mxu0 %v324_v3  ;;  %v137_v12 = vld [vmem:[%s519_s3 + $0x18] sm:$0xff]  ;;  %v138_v14 = vld [vmem:[%s519_s3 + $0x20] sm:$0xff]  ;;  %v139_v15 = vld [vmem:[%s519_s3 + $0x28] sm:$0xff]  ;;  %s239_s12 = sshll.u32 %s395_s11, 4  ;;  %s240_s12 = int_to_ptr.vmem [resolvable:$true] %s239_s12 }
   0x6   :  { %329 = vmatprep.subr.bf16.mxu0 %v328_v6  ;;  %333 = vmatprep.subr.bf16.mxu1 %v332_v9  ;;  %v336_v13 = vpack.c.bf16 %v137_v12, %v136_v11  ;;  %v340_v16 = vpack.c.bf16 %v139_v15, %v138_v14  ;;  %v140_v17 = vld [vmem:[%s519_s3 + $0x30] sm:$0xff]  ;;  %v141_v18 = vld [vmem:[%s519_s3 + $0x38] sm:$0xff]  ;;  %v142_v19 = vld [vmem:[%s519_s3 + $0x40] sm:$0xff]  ;;  %s371_s13 = scalar_lea.vmem %s240_s12, 256  ;;  %p376_p1 = scmp.lt.s32.totalorder %s240_s12, %s240_s12 }
   0x7   :  { %335 = vmatpush3.bf16.msra.mxu1 %v332_v9  ;;  %v344_v20 = vpack.c.bf16 %v141_v18, %v140_v17  ;;  %v143_v21 = vld [vmem:[%s519_s3 + $0x48] sm:$0xff]  ;;  %v144_v23 = vld [vmem:[%s519_s3 + $0x50] sm:$0xff]  ;;  %v145_v24 = vld [vmem:[%s519_s3 + $0x58] sm:$0xff]  ;;  %p372_p0 = scmp.ne.s32.totalorder %s240_s12, %s371_s13  ;;  %p377_p2 = scmp.lt.s32.totalorder %s371_s13, %s371_s13 }
   0x8   :  { %337 = vmatprep.subr.bf16.mxu1 %v336_v13  ;;  %v348_v22 = vpack.c.bf16 %v143_v21, %v142_v19  ;;  %v352_v25 = vpack.c.bf16 %v145_v24, %v144_v23  ;;  %v146_v26 = vld [vmem:[%s519_s3 + $0x60] sm:$0xff]  ;;  %v147_v27 = vld [vmem:[%s519_s3 + $0x68] sm:$0xff]  ;;  %v148_v29 = vld [vmem:[%s519_s3 + $0x70] sm:$0xff] }
   0x9   :  { %331 = vmatpush3.bf16.msra.mxu0 %v328_v6  ;;  %v356_v28 = vpack.c.bf16 %v147_v27, %v146_v26  ;;  %v149_v30 = vld [vmem:[%s519_s3 + $0x78] sm:$0xff]  ;;  %v250_v32 = vld [vmem:[%s518_s2] ss:$0 sm:$0xff]  ;;  %p378_p3 = por %p377_p2, %p376_p1 }
   0xa   :  { %v360_v31 = vpack.c.bf16 %v149_v30, %v148_v29  ;;  %v253_v55 = vld [vmem:[%s520_s4] ss:$0 sm:$0xff] }
   0xb   :  { %339 = vmatpush3.bf16.msra.mxu1 %v336_v13  ;;  %p379_p4 = pnand %p378_p3, %p372_p0 }
   0xc   :  { %287 = vmatmul.mubr.msk.f32.vlgmr.msra.gmra.mrb[0].mxu0 %vm34_vm0, %v22_v10  ;;  %341 = vmatprep.subr.bf16.mxu1 %v340_v16 }
   0xf   :  { %343 = vmatpush3.bf16.msra.mxu1 %v340_v16 }
  0x10   :  { %345 = vmatprep.subr.bf16.mxu1 %v344_v20 }
  0x13   :  { %347 = vmatpush3.bf16.msra.mxu1 %v344_v20 }
  0x14   :  { %349 = vmatprep.subr.bf16.mxu1 %v348_v22 }
  0x17   :  { %351 = vmatpush3.bf16.msra.mxu1 %v348_v22 }
  0x18   :  { %353 = vmatprep.subr.bf16.mxu1 %v352_v25 }
  0x1b   :  { %355 = vmatpush3.bf16.msra.mxu1 %v352_v25 }
  0x1c   :  { %357 = vmatprep.subr.bf16.mxu1 %v356_v28 }
  0x1f   :  { %359 = vmatpush3.bf16.msra.mxu1 %v356_v28 }
  0x20   :  { %361 = vmatprep.subr.bf16.mxu1 %v360_v31 }
  0x23   :  { %363 = vmatpush3.bf16.msra.mxu1 %v360_v31 }
  0xdf   :  { %v288_v33 = vpop.f32.mrb[0].mxu0 }
  0xe0   :  { %v113_v34 = vadd.f32 %v288_v33, %v250_v32  ;;  %v107_v35 = vpop.f32.mrb[1].mxu0 }
  0xe1   :  { %v108_v36 = vadd.f32 %v250_v32, %v107_v35 }
  0xe2   :  { %v119_v37 = vmul.f32 0.044715, %v113_v34  ;;  %v117_v52 = vmul.f32 0.5, %v113_v34 }
  0xe3   :  { %v118_v38 = vmul.f32 0.044715, %v108_v36  ;;  %v116_v50 = vmul.f32 0.5, %v108_v36 }
  0xe4   :  { %v121_v39 = vmul.f32 %v119_v37, %v113_v34 }
  0xe5   :  { %v120_v40 = vmul.f32 %v118_v38, %v108_v36 }
  0xe6   :  { %v123_v41 = vmul.f32 %v121_v39, %v113_v34 }
  0xe7   :  { %v122_v42 = vmul.f32 %v120_v40, %v108_v36 }
  0xe8   :  { %v125_v43 = vadd.f32 %v123_v41, %v113_v34 }
  0xe9   :  { %v124_v44 = vadd.f32 %v122_v42, %v108_v36 }
  0xea   :  { %v127_v45 = vmul.f32 0.7978846, %v125_v43 }
  0xeb   :  { %v126_v46 = vmul.f32 0.7978846, %v124_v44 }
  0xec   :  { %367 = vtanh.f32 %v127_v45 }
  0xed   :  { %369 = vtanh.f32 %v126_v46 }
  0xf6   :  { %v368_v47 = vpop.eup %367 }
  0xf7   :  { %v370_v48 = vpop.eup %369  ;;  %v131_v49 = vadd.f32 1.0, %v368_v47 }
  0xf8   :  { %v130_v51 = vadd.f32 1.0, %v370_v48 }
  0xf9   :  { %v133_v54 = vmul.f32 %v131_v49, %v117_v52 }
  0xfa   :  { %v132_v53 = vmul.f32 %v130_v51, %v116_v50 }
  0xfc   :  { %321 = vmatprep.mubr.f32.mxu1 %v132_v53 }
  0xfd   :  { %322 = vmatmul.mubr.f32.vlgmr.msra.gmra.mrb[0].mxu1 %v133_v54 }
 0x1d0   :  { %v323_v56 = vpop.f32.mrb[0].mxu1 }
 0x1d1   :  { %v229_v57 = vadd.f32 %v323_v56, %v253_v55  ;;  %v223_v58 = vpop.f32.mrb[1].mxu1 }
 0x1d2   :  { %v224_v59 = vadd.f32 %v253_v55, %v223_v58 }
 0x1d3   :  { %233 = vst.msk [vmem:[#allocation2 + $0x8] sm:$0xff] %vm34_vm0, %v229_v57 }
 0x1d4   :  { %232 = vst.msk [vmem:[#allocation2] sm:$0xff] %vm34_vm0, %v224_v59 }
 0x1d5   :  { %382 = shalt.err (!%p379_p4)
}
 0x1d6   :  { %s383_s15 = scalar_lea.hbm %s521_s5, 256 }
 0x1d7   :  { %p384_p5 = scmp.ne.s32.totalorder %s521_s5, %s383_s15  ;;  %p387_p6 = scmp.lt.u32.totalorder %s383_s15, %s521_s5 }
 0x1d9   :  { %p389_p7 = pnand %p387_p6, %p384_p5 }
 0x1db   :  { %392 = shalt.err (!%p389_p7)
}
 0x1dc   :  { %s396_s19 = smov 128   ;;  %s397_s20 = smov 8  }
 0x1dd   :  { %245 = dma.vmem_to_hbm [thread:$0]  %s240_s12, 256, %s521_s5, [#allocation3], %s396_s19, %s396_s19, %s397_s20  }
 0x1de   :  { %393 = dma.done.wait [#allocation3], 256  }
 0x1df   :  { %394 = vsyncadd [#allocation3], 4294967040 }
 0x1e0   :  { %249 = vsyncpa [#allocation3], 1 }

</bundles_post_ra>
